<compile_context>
chip_gen: v7x
topology: tpu7x:2x2x1
jax: 0.10.0
libtpu: 0.0.40
codegen_flags: <defaults>
</compile_context>

<pallas_src>
import functools

import jax
import jax.numpy as jnp
from jax import lax
from jax.experimental import pallas as pl
from jax.experimental.pallas import tpu as pltpu


# ----------------------------------------------------------------------------
# Kernel A: backbone | high-prob | kNN adjacency mask (int8), per (batch, row tile).
# kNN is done in-kernel with k iterative masked row-min passes: no dist2 output,
# no wrapper-side top_k.  Grid = (B, L // TR).
# ----------------------------------------------------------------------------
def _graph_kernel(high_prob_threshold, knn_k, x_ref, xr_ref, bppm_ref, mask_ref):
    f32 = jnp.float32
    TR = bppm_ref.shape[1]
    L = bppm_ref.shape[2]
    r0 = pl.program_id(1) * TR

    xtp = x_ref[0]                                               # (8, L), rows 3..7 zero
    xt_r = xr_ref[0]                                             # (8, TR) row tile (BlockSpec)
    n_row = jnp.sum(xtp * xtp, axis=0, keepdims=True)            # (1, L)
    n_col = jnp.sum(xt_r * xt_r, axis=0, keepdims=True).T        # (TR, 1)
    g = lax.dot_general(xt_r, xtp, (((0,), (0,)), ((), ())),
                        preferred_element_type=f32)              # (TR, L)
    d2 = jnp.maximum(n_col + n_row - 2.0 * g, 0.0)

    row = lax.broadcasted_iota(jnp.int32, (TR, L), 0) + r0
    col = lax.broadcasted_iota(jnp.int32, (TR, L), 1)
    is_diag = row == col

    big = jnp.float32(1e30)
    d = jnp.where(is_diag, big, d2)                              # diag excluded

    # k-th smallest per row via k iterative min-removals (ties at k-th included,
    # matching the previous `dist2 <= kth` semantics).  All comparisons in f32.
    if knn_k >= 1:
        work = d
        kth = jnp.full((TR, 1), big, f32)
        for _ in range(knn_k):
            kth = jnp.min(work, axis=1, keepdims=True)
            work = jnp.where(work <= kth, big, work)
        knn = d <= kth
    else:
        knn = jnp.zeros((TR, L), jnp.bool_)

    P = bppm_ref[0]                                              # (TR, L) f32
    backbone = jnp.abs(row - col) == 1
    hp = (col > row) & (P >= jnp.float32(high_prob_threshold)) & jnp.logical_not(backbone)

    mask = (backbone | hp | knn) & jnp.logical_not(is_diag)
    mask_ref[0] = mask.astype(jnp.int8)


def _build_graph(coords_p, bppm, high_prob_threshold, knn_k, row_tile, vmem_limit):
    B, _, L = coords_p.shape
    kernel = functools.partial(_graph_kernel, float(high_prob_threshold), int(knn_k))
    return pl.pallas_call(
        kernel,
        grid_spec=pltpu.PrefetchScalarGridSpec(
            num_scalar_prefetch=0,
            grid=(B, L // row_tile),
            in_specs=[
                pl.BlockSpec((1, 8, L), lambda b, r: (b, 0, 0)),          # full coords
                pl.BlockSpec((1, 8, row_tile), lambda b, r: (b, 0, r)),   # row-tile coords
                pl.BlockSpec((1, row_tile, L), lambda b, r: (b, r, 0)),   # bppm rows
            ],
            out_specs=pl.BlockSpec((1, row_tile, L), lambda b, r: (b, r, 0)),
        ),
        out_shape=jax.ShapeDtypeStruct((B, L, L), jnp.int8),
        compiler_params=pltpu.CompilerParams(
            dimension_semantics=("parallel", "parallel"),
            vmem_limit_bytes=int(vmem_limit)),
    )(coords_p, coords_p, bppm)


# ----------------------------------------------------------------------------
# Kernel B: SE(3)-equivariant message-passing refinement, bf16 src-tile streamed.
# ----------------------------------------------------------------------------
def _refine_kernel(num_layers, tile_src,
                   seq_ref, coords_ref, bppm_ref, adj_ref, invdeg_ref, pair_hbm,
                   w_in_ref, b_in_ref, w_node_ref, w_h2_ref, w_e_ref,
                   w_eb_ref, w_d_ref, b_e_ref, w_x_ref, b_h_ref,
                   out_ref, pbuf, sem):
    f32 = jnp.float32
    b = pl.program_id(0)
    L = bppm_ref.shape[1]
    H = w_in_ref.shape[1]
    Dp = pair_hbm.shape[-1]
    Tj = tile_src
    n_tiles = L // Tj
    total_steps = num_layers * n_tiles

    # -- manual double-buffered streaming of bf16 (Tj, L, Dp) pair slabs from HBM --
    def fetch(t, slot):
        start = pl.multiple_of(t * Tj, Tj)
        pltpu.make_async_copy(pair_hbm.at[b, pl.ds(start, Tj)],
                              pbuf.at[slot], sem.at[slot]).start()

    def wait_slot(slot):
        pltpu.make_async_copy(pair_hbm.at[b, pl.ds(0, Tj)],
                              pbuf.at[slot], sem.at[slot]).wait()

    fetch(0, 0)

    # -- degree-0 input embedding, then kept transposed (H, L): lanes = nodes --
    h0 = jnp.dot(seq_ref[0], w_in_ref[...], preferred_element_type=f32) + b_in_ref[...]
    h0 = h0 * jax.nn.sigmoid(h0)                                 # silu, (L, H)
    ht = h0.T                                                    # (H, L)

    xtp = coords_ref[0]                                          # (8, L) f32, rows 3..7 zero
    inv_deg = invdeg_ref[0]                                      # (1, L) f32 (precomputed)

    for layer in range(num_layers):
        # fused node projections [w_a^T ; w_b^T ; w_h1^T] @ ht -> (3H, L)
        proj = jnp.dot(w_node_ref[layer], ht, preferred_element_type=f32)
        ha_t = proj[0:H][None]                                   # (1, H, L)  dst projection
        hb_lh = proj[H:2 * H].T                                  # (L, H)     src proj (per-layer T)
        u1_t = proj[2 * H:3 * H]                                 # (H, L)     self update

        n_row = jnp.sum(xtp * xtp, axis=0, keepdims=True)        # (1, L)
        xc = xtp.T                                               # (L, 8)  sublane-sliceable coords

        # per-layer broadcasts hoisted out of the tile loop (w_e stays bf16 for the MXU)
        w_e_b = jnp.broadcast_to(w_e_ref[layer][None], (Tj, H, Dp))
        w_d_l = w_d_ref[layer][None]                             # (1, H, 1)
        w_eb_l = w_eb_ref[layer][None]
        b_e_l = b_e_ref[layer][None]
        w_x_l = w_x_ref[layer][None]

        def tile_body(t, carry, layer=layer, ha_t=ha_t, hb_lh=hb_lh,
                      n_row=n_row, xc=xc, w_e_b=w_e_b, w_d_l=w_d_l,
                      w_eb_l=w_eb_l, b_e_l=b_e_l, w_x_l=w_x_l):
            agg_t, gsum, gx = carry
            step = layer * n_tiles + t
            slot = step % 2
            wait_slot(slot)

            @pl.when(step + 1 < total_steps)
            def _():
                s1 = step + 1
                fetch(s1 % n_tiles, s1 % 2)

            j0 = pl.multiple_of(t * Tj, Tj)

            # edge projection: bf16 slab fed straight to the MXU, f32 accumulation
            pair_t = pbuf[slot]                                  # (Tj, L, Dp) bf16
            ee = lax.dot_general(w_e_b, pair_t, (((2,), (2,)), ((0,), (0,))),
                                 preferred_element_type=f32)     # (Tj, H, L)

            bpp_t = bppm_ref[0, pl.ds(j0, Tj), :].astype(f32)    # (Tj, L)
            adj_t = adj_ref[0, pl.ds(j0, Tj), :].astype(f32)     # (Tj, L)

            xc_j = lax.dynamic_slice_in_dim(xc, j0, Tj, axis=0)  # (Tj, 8) sublane slice
            g_t = lax.dot_general(xc_j, xtp, (((1,), (0,)), ((), ())),
                                  preferred_element_type=f32)    # (Tj, L)
            nc_j = jnp.sum(xc_j * xc_j, axis=1, keepdims=True)   # (Tj, 1)
            d2_t = jnp.maximum(nc_j + n_row - 2.0 * g_t, 0.0)

            hb_j = lax.dynamic_slice_in_dim(hb_lh, j0, Tj, axis=0)   # (Tj, H)

            # message for edge (src j -> dst i): feature = [pair[j, i], bppm[j, i]]
            m = (ha_t + hb_j[:, :, None] + ee
                 + d2_t[:, None, :] * w_d_l
                 + bpp_t[:, None, :] * w_eb_l
                 + b_e_l)                                        # (Tj, H, L)
            m = m * jax.nn.sigmoid(m)                            # silu
            m = m * adj_t[:, None, :]                            # mask non-edges

            agg_t = agg_t + jnp.sum(m, axis=0)                   # (H, L)
            gate = jnp.sum(m * w_x_l, axis=1)                    # (Tj, L)
            gsum = gsum + jnp.sum(gate, axis=0, keepdims=True)   # (1, L)
            gx = gx + lax.dot_general(xc_j, gate, (((0,), (0,)), ((), ())),
                                      preferred_element_type=f32)    # (8, L)
            return agg_t, gsum, gx

        init = (jnp.zeros((H, L), f32), jnp.zeros((1, L), f32), jnp.zeros((8, L), f32))
        agg_t, gsum, gx = lax.fori_loop(0, n_tiles, tile_body, init,
                                        unroll=2 if n_tiles >= 2 else 1)

        # equivariant coordinate update: x_i += sum_j gate[j,i] (x_i - x_j) / (deg_i + 1)
        xtp = xtp + (gsum * xtp - gx) * inv_deg

        # invariant node update
        u_t = (u1_t + jnp.dot(w_h2_ref[layer], agg_t, preferred_element_type=f32)
               + b_h_ref[layer])
        ht = ht + u_t * jax.nn.sigmoid(u_t)

    out_ref[0] = xtp.astype(out_ref.dtype)                       # (8, L); rows 0..2 = xyz


# ----------------------------------------------------------------------------
# Parameters (deterministic, in-script; transposed / fused layouts).
# ----------------------------------------------------------------------------
_PARAM_ORDER = ("w_in", "b_in", "w_node_t", "w_h2_t", "w_e_t",
                "w_eb", "w_d", "b_e", "w_x", "b_h")


def init_params(key, seq_embed_dim, pair_embed_dim, hidden_channels, num_layers):
    H = hidden_channels
    edge_dim = pair_embed_dim + 1
    ks = jax.random.split(key, 7)

    def lin(k, shape, fan_in, scale=1.0):
        return (scale * jax.random.normal(k, shape, jnp.float32)
                / jnp.sqrt(jnp.float32(fan_in)))

    return {
        "w_in":     lin(ks[0], (seq_embed_dim, H), seq_embed_dim),
        "b_in":     jnp.zeros((1, H), jnp.float32),
        # fused & transposed node projections: rows = [w_a^T ; w_b^T ; w_h1^T]
        "w_node_t": lin(ks[1], (num_layers, 3 * H, H), H),
        "w_h2_t":   lin(ks[2], (num_layers, H, H), H),
        "w_e_t":    lin(ks[3], (num_layers, H, pair_embed_dim), edge_dim),
        "w_eb":     lin(ks[4], (num_layers, H, 1), edge_dim),      # bppm edge channel
        "w_d":      lin(ks[5], (num_layers, H, 1), 1, scale=0.1),
        "b_e":      jnp.zeros((num_layers, H, 1), jnp.float32),
        "w_x":      lin(ks[6], (num_layers, H, 1), H, scale=0.1),
        "b_h":      jnp.zeros((num_layers, H, 1), jnp.float32),
    }


# ----------------------------------------------------------------------------
# Tiling / VMEM helpers (generation-aware).
# ----------------------------------------------------------------------------
def _vmem_capacity_bytes():
    try:
        return int(pltpu.get_tpu_info().vmem_capacity_bytes)
    except Exception:
        return 64 * 2**20      # conservative (v7x-sized) fallback


def _pick_src_tile(L, d_pair, itemsize, budget_bytes):
    t = min(L, 128)
    while t > 8:
        if L % t == 0 and 2 * t * L * d_pair * itemsize <= budget_bytes:
            return t
        t -= 8
    return 8 if L % 8 == 0 else L


def _pick_row_tile(L):
    # last dim of the row-tile coords block must be a multiple of 128 or == L
    for t in (256, 128):
        if L % t == 0:
            return t
    return L


# ----------------------------------------------------------------------------
# Forward pass.
# ----------------------------------------------------------------------------
def coordinate_refiner_forward(params, sequence_rep, pair_rep, bppm, initial_coords,
                               *, knn_k=16, high_prob_threshold=0.3, num_layers=3):
    B, L, _ = initial_coords.shape
    assert L % 8 == 0, "sequence length must be a multiple of 8"
    bppm_f32 = bppm.astype(jnp.float32)

    vmem_cap = _vmem_capacity_bytes()
    vmem_ceiling = int(0.85 * vmem_cap)          # never request more than physical VMEM

    # coords in lane-dense transposed+padded layout (B, 8, L): rows 0..2 xyz, 3..7 zero
    coords_t = jnp.swapaxes(initial_coords.astype(jnp.float32), 1, 2)      # (B, 3, L)
    coords_p = jnp.concatenate([coords_t, jnp.zeros((B, 5, L), jnp.float32)], axis=1)

    # --- kernel A: backbone | high-prob | kNN mask (kNN selection in-kernel) ---
    row_tile = _pick_row_tile(L)
    k_eff = min(knn_k, L - 1)
    mask = _build_graph(coords_p, bppm_f32, high_prob_threshold, k_eff, row_tile,
                        vmem_limit=min(64 * 2**20, vmem_ceiling))

    mb = mask > 0
    adj = (mb | jnp.swapaxes(mb, 1, 2)).astype(jnp.int8)                    # symmetric, zero diag
    # in-degree per dst node (precomputed so the kernel never reduces the full adjacency)
    inv_deg = (1.0 / (jnp.sum(adj.astype(jnp.float32), axis=1) + 1.0))[:, None, :]  # (B,1,L)
    # TODO(synk): Nussinov-DP / max-weight-matching secondary-structure edges are
    #             omitted; only backbone, kNN and high-probability edges are used.

    # --- kernel B: refinement; pair_rep / bppm streamed as bf16 (math stays f32) ---
    pair_bf = pair_rep.astype(jnp.bfloat16)
    bppm_bf = bppm_f32.astype(jnp.bfloat16)

    Dseq = sequence_rep.shape[-1]
    Dp = pair_rep.shape[-1]
    H = params["w_in"].shape[1]
    slab_budget = min(32 * 2**20, vmem_cap // 4)            # ~16 MiB on v7x, 32 MiB on v5e/v6e
    tile_src = _pick_src_tile(L, Dp, 2, slab_budget)         # bf16 itemsize = 2

    param_vals = [params[n] for n in _PARAM_ORDER]
    param_vals[_PARAM_ORDER.index("w_e_t")] = params["w_e_t"].astype(jnp.bfloat16)

    def batched(shape):
        n = len(shape)
        return pl.BlockSpec((1,) + shape, lambda b, n=n: (b,) + (0,) * n)

    def const(shape):
        n = len(shape)
        return pl.BlockSpec(shape, lambda b, n=n: (0,) * n)

    in_specs = ([batched((L, Dseq)),                 # sequence_rep (f32)
                 batched((8, L)),                    # padded transposed coords
                 batched((L, L)),                    # bppm (bf16)
                 batched((L, L)),                    # adjacency (int8)
                 batched((1, L)),                    # inv_deg (f32)
                 pl.BlockSpec(memory_space=pl.ANY)]  # pair_rep stays in HBM, streamed
                + [const(p.shape) for p in param_vals])

    # scoped-VMEM estimate: bf16 pair double-buffer + pipelined resident blocks + temps
    est = (2 * tile_src * L * Dp * 2
           + 2 * (L * L * 2 + L * L + L * Dseq * 4 + 2 * 8 * L * 4 + L * 4)
           + 8 * tile_src * H * L * 4
           + 16 * H * L * 4)
    vmem_limit = int(min(vmem_ceiling, max(48 * 2**20, int(1.5 * est))))

    kernel = functools.partial(_refine_kernel, num_layers, tile_src)
    refined_t = pl.pallas_call(
        kernel,
        grid_spec=pltpu.PrefetchScalarGridSpec(
            num_scalar_prefetch=0,
            grid=(B,),
            in_specs=in_specs,
            out_specs=pl.BlockSpec((1, 8, L), lambda b: (b, 0, 0)),
            scratch_shapes=[
                pltpu.VMEM((2, tile_src, L, Dp), jnp.bfloat16),   # bf16 pair double-buffer
                pltpu.SemaphoreType.DMA((2,)),
            ]),
        out_shape=jax.ShapeDtypeStruct((B, 8, L), jnp.float32),
        compiler_params=pltpu.CompilerParams(
            dimension_semantics=("parallel",),
            vmem_limit_bytes=vmem_limit),
    )(sequence_rep.astype(jnp.float32), coords_p, bppm_bf, adj, inv_deg, pair_bf,
      *param_vals)

    # refined = initial + accumulated equivariant delta
    return jnp.swapaxes(refined_t[:, :3, :], 1, 2)                          # (B, L, 3)


# ----------------------------------------------------------------------------
# Demo
# ----------------------------------------------------------------------------
if __name__ == "__main__":
    B, L = 2, 16
    seq_embed_dim = 64       # module default 640; small test size
    pair_embed_dim = 16      # module default 128; small test size
    hidden_channels = 32
    num_layers = 3
    knn_k = 4
    high_prob_threshold = 0.3

    key = jax.random.PRNGKey(0)
    k1, k2, k3, k4, kp = jax.random.split(key, 5)
    sequence_rep = jax.random.normal(k1, (B, L, seq_embed_dim), jnp.float32)
    pair_rep = jax.random.normal(k2, (B, L, L, pair_embed_dim), jnp.float32)
    bppm = jax.nn.sigmoid(jax.random.normal(k3, (B, L, L), jnp.float32))
    bppm = 0.5 * (bppm + jnp.swapaxes(bppm, 1, 2))
    initial_coords = 5.0 * jax.random.normal(k4, (B, L, 3), jnp.float32)

    params = init_params(kp, seq_embed_dim, pair_embed_dim, hidden_channels, num_layers)

    refined = coordinate_refiner_forward(
        params, sequence_rep, pair_rep, bppm, initial_coords,
        knn_k=knn_k, high_prob_threshold=high_prob_threshold, num_layers=num_layers)
    refined = jax.block_until_ready(refined)

    assert refined.shape == (B, L, 3)
    assert bool(jnp.all(jnp.isfinite(refined)))
    print("KERNEL_OK")
</pallas_src>

<mosaic_0001>
module attributes {stable_mosaic.version = 11 : i64} {
  func.func @_graph_kernel(%arg0: i32, %arg1: i32, %arg2: memref<1x8x16xf32, #tpu.memory_space<vmem>>, %arg3: memref<1x8x16xf32, #tpu.memory_space<vmem>>, %arg4: memref<1x16x16xf32, #tpu.memory_space<vmem>>, %arg5: memref<1x16x16xi8, #tpu.memory_space<vmem>>) attributes {dimension_semantics = [#tpu.dimension_semantics<parallel>, #tpu.dimension_semantics<parallel>], iteration_bounds = array<i64: 2, 1>, scalar_prefetch = 0 : i64, scratch_operands = 0 : i64, tpu.core_type = #tpu.core_type<tc>, window_params = [{transform_indices = @transform_0, window_bounds = array<i64: 1, 8, 16>}, {transform_indices = @transform_1, window_bounds = array<i64: 1, 8, 16>}, {transform_indices = @transform_2, window_bounds = array<i64: 1, 16, 16>}, {transform_indices = @transform_3, window_bounds = array<i64: 1, 16, 16>}]} {
    %c16_i32 = arith.constant 16 : i32
    %0 = arith.muli %arg1, %c16_i32 : i32
    %c0 = arith.constant 0 : index
    %c0_0 = arith.constant 0 : index
    %c0_1 = arith.constant 0 : index
    %1 = vector.load %arg2[%c0, %c0_0, %c0_1] : memref<1x8x16xf32, #tpu.memory_space<vmem>>, vector<1x8x16xf32>
    %2 = vector.shape_cast %1 : vector<1x8x16xf32> to vector<8x16xf32>
    %c0_2 = arith.constant 0 : index
    %c0_3 = arith.constant 0 : index
    %c0_4 = arith.constant 0 : index
    %3 = vector.load %arg3[%c0_2, %c0_3, %c0_4] : memref<1x8x16xf32, #tpu.memory_space<vmem>>, vector<1x8x16xf32>
    %4 = vector.shape_cast %3 : vector<1x8x16xf32> to vector<8x16xf32>
    %5 = arith.mulf %2, %2 : vector<8x16xf32>
    %cst = arith.constant dense<0.000000e+00> : vector<16xf32>
    %6 = vector.multi_reduction <add>, %5, %cst [0] : vector<8x16xf32> to vector<16xf32>
    %7 = vector.shape_cast %6 : vector<16xf32> to vector<1x16xf32>
    %8 = arith.mulf %4, %4 : vector<8x16xf32>
    %cst_5 = arith.constant dense<0.000000e+00> : vector<16xf32>
    %9 = vector.multi_reduction <add>, %8, %cst_5 [0] : vector<8x16xf32> to vector<16xf32>
    %10 = vector.shape_cast %9 : vector<16xf32> to vector<1x16xf32>
    %11 = tpu.transpose %10, [1, 0] : vector<1x16xf32> -> vector<16x1xf32>
    %cst_6 = arith.constant dense<0.000000e+00> : vector<16x16xf32>
    %12 = tpu.matmul %4, %2, %cst_6 {dimension_numbers = #tpu.dot_dimension_numbers<[0], [0], [1], [1], [0, 1, 1, 1], [], []>} : vector<8x16xf32>, vector<8x16xf32>, vector<16x16xf32> -> vector<16x16xf32>
    %13 = vector.broadcast %11 : vector<16x1xf32> to vector<16x16xf32>
    %14 = vector.broadcast %7 : vector<1x16xf32> to vector<16x16xf32>
    %15 = arith.addf %13, %14 : vector<16x16xf32>
    %cst_7 = arith.constant 2.000000e+00 : f32
    %16 = vector.broadcast %cst_7 : f32 to vector<16x16xf32>
    %17 = arith.mulf %16, %12 : vector<16x16xf32>
    %18 = arith.subf %15, %17 : vector<16x16xf32>
    %cst_8 = arith.constant 0.000000e+00 : f32
    %19 = vector.broadcast %cst_8 : f32 to vector<16x16xf32>
    %20 = arith.maximumf %18, %19 : vector<16x16xf32>
    %21 = tpu.iota {dimensions = array<i32: 0>} : vector<16x16xi32>
    %22 = vector.broadcast %0 : i32 to vector<16x16xi32>
    %23 = arith.addi %21, %22 : vector<16x16xi32>
    %24 = tpu.iota {dimensions = array<i32: 1>} : vector<16x16xi32>
    %25 = arith.cmpi eq, %23, %24 : vector<16x16xi32>
    %cst_9 = arith.constant 1.000000e+30 : f32
    %26 = vector.broadcast %cst_9 : f32 to vector<16x16xf32>
    %27 = arith.select %25, %26, %20 : vector<16x16xi1>, vector<16x16xf32>
    %cst_10 = arith.constant dense<0x7F800000> : vector<16xf32>
    %28 = vector.multi_reduction <minimumf>, %27, %cst_10 [1] : vector<16x16xf32> to vector<16xf32>
    %29 = vector.shape_cast %28 : vector<16xf32> to vector<16x1xf32>
    %30 = vector.broadcast %29 : vector<16x1xf32> to vector<16x16xf32>
    %31 = arith.cmpf ole, %27, %30 : vector<16x16xf32>
    %cst_11 = arith.constant 1.000000e+30 : f32
    %32 = vector.broadcast %cst_11 : f32 to vector<16x16xf32>
    %33 = arith.select %31, %32, %27 : vector<16x16xi1>, vector<16x16xf32>
    %cst_12 = arith.constant dense<0x7F800000> : vector<16xf32>
    %34 = vector.multi_reduction <minimumf>, %33, %cst_12 [1] : vector<16x16xf32> to vector<16xf32>
    %35 = vector.shape_cast %34 : vector<16xf32> to vector<16x1xf32>
    %36 = vector.broadcast %35 : vector<16x1xf32> to vector<16x16xf32>
    %37 = arith.cmpf ole, %33, %36 : vector<16x16xf32>
    %cst_13 = arith.constant 1.000000e+30 : f32
    %38 = vector.broadcast %cst_13 : f32 to vector<16x16xf32>
    %39 = arith.select %37, %38, %33 : vector<16x16xi1>, vector<16x16xf32>
    %cst_14 = arith.constant dense<0x7F800000> : vector<16xf32>
    %40 = vector.multi_reduction <minimumf>, %39, %cst_14 [1] : vector<16x16xf32> to vector<16xf32>
    %41 = vector.shape_cast %40 : vector<16xf32> to vector<16x1xf32>
    %42 = vector.broadcast %41 : vector<16x1xf32> to vector<16x16xf32>
    %43 = arith.cmpf ole, %39, %42 : vector<16x16xf32>
    %cst_15 = arith.constant 1.000000e+30 : f32
    %44 = vector.broadcast %cst_15 : f32 to vector<16x16xf32>
    %45 = arith.select %43, %44, %39 : vector<16x16xi1>, vector<16x16xf32>
    %cst_16 = arith.constant dense<0x7F800000> : vector<16xf32>
    %46 = vector.multi_reduction <minimumf>, %45, %cst_16 [1] : vector<16x16xf32> to vector<16xf32>
    %47 = vector.shape_cast %46 : vector<16xf32> to vector<16x1xf32>
    %48 = vector.broadcast %47 : vector<16x1xf32> to vector<16x16xf32>
    %49 = arith.cmpf ole, %27, %48 : vector<16x16xf32>
    %c0_17 = arith.constant 0 : index
    %c0_18 = arith.constant 0 : index
    %c0_19 = arith.constant 0 : index
    %50 = vector.load %arg4[%c0_17, %c0_18, %c0_19] : memref<1x16x16xf32, #tpu.memory_space<vmem>>, vector<1x16x16xf32>
    %51 = vector.shape_cast %50 : vector<1x16x16xf32> to vector<16x16xf32>
    %52 = arith.subi %23, %24 : vector<16x16xi32>
    %53 = math.absi %52 : vector<16x16xi32>
    %c1_i32 = arith.constant 1 : i32
    %54 = vector.broadcast %c1_i32 : i32 to vector<16x16xi32>
    %55 = arith.cmpi eq, %53, %54 : vector<16x16xi32>
    %56 = arith.cmpi sgt, %24, %23 : vector<16x16xi32>
    %cst_20 = arith.constant 3.000000e-01 : f32
    %57 = vector.broadcast %cst_20 : f32 to vector<16x16xf32>
    %58 = arith.cmpf oge, %51, %57 : vector<16x16xf32>
    %59 = arith.andi %56, %58 : vector<16x16xi1>
    %cst_21 = arith.constant dense<true> : vector<16x16xi1>
    %60 = arith.xori %55, %cst_21 : vector<16x16xi1>
    %61 = arith.andi %59, %60 : vector<16x16xi1>
    %62 = arith.ori %55, %61 : vector<16x16xi1>
    %63 = arith.ori %62, %49 : vector<16x16xi1>
    %cst_22 = arith.constant dense<true> : vector<16x16xi1>
    %64 = arith.xori %25, %cst_22 : vector<16x16xi1>
    %65 = arith.andi %63, %64 : vector<16x16xi1>
    %66 = arith.extui %65 : vector<16x16xi1> to vector<16x16xi8>
    %c0_23 = arith.constant 0 : index
    %c0_24 = arith.constant 0 : index
    %c0_25 = arith.constant 0 : index
    %67 = vector.load %arg5[%c0_23, %c0_24, %c0_25] : memref<1x16x16xi8, #tpu.memory_space<vmem>>, vector<1x16x16xi8>
    %68 = vector.shape_cast %67 : vector<1x16x16xi8> to vector<16x16xi8>
    %69 = vector.shape_cast %66 : vector<16x16xi8> to vector<1x16x16xi8>
    tpu.vector_store %arg5[%c0_23, %c0_24, %c0_25], %69 {strides = array<i32>} : memref<1x16x16xi8, #tpu.memory_space<vmem>>, vector<1x16x16xi8>,
    return
  }
  func.func @transform_0(%arg0: i32, %arg1: i32) -> (i32, i32, i32) {
    %c0_i32 = arith.constant 0 : i32
    %c0_i32_0 = arith.constant 0 : i32
    %c0_i32_1 = arith.constant 0 : i32
    return %arg0, %c0_i32, %c0_i32_0 : i32, i32, i32
  }
  func.func @transform_1(%arg0: i32, %arg1: i32) -> (i32, i32, i32) {
    %c0_i32 = arith.constant 0 : i32
    %c0_i32_0 = arith.constant 0 : i32
    return %arg0, %c0_i32, %arg1 : i32, i32, i32
  }
  func.func @transform_2(%arg0: i32, %arg1: i32) -> (i32, i32, i32) {
    %c0_i32 = arith.constant 0 : i32
    %c0_i32_0 = arith.constant 0 : i32
    return %arg0, %arg1, %c0_i32 : i32, i32, i32
  }
  func.func @transform_3(%arg0: i32, %arg1: i32) -> (i32, i32, i32) {
    %c0_i32 = arith.constant 0 : i32
    %c0_i32_0 = arith.constant 0 : i32
    return %arg0, %arg1, %c0_i32 : i32, i32, i32
  }
}

</mosaic_0001>

<bundles_post_ra>
// kernel: tpu_custom_call.1
= control target key start
LH: loop header
LB: loop body
LE: loop exit
PB: predicated region body
PF: predicated region fallthrough
CT: control target
= control target key end

     0   :  { %s1352_s0 = inlined_call_operand.hbm [shape: f32[2,8,16], index: 0, kind: input, shape index: {}]   ;;  %s1353_s1 = inlined_call_operand.hbm [shape: f32[2,8,16], index: 1, kind: input, shape index: {}]   ;;  %s1354_s2 = inlined_call_operand.hbm [shape: f32[2,16,16], index: 2, kind: input, shape index: {}]   ;;  %s1355_s3 = inlined_call_operand.hbm [shape: s8[2,16,16], index: 3, kind: output, shape index: {}]  }
   0x1   :  { %1362 = sst [smem:[#allocation15_spill]] %s1353_s1 }
   0x2   :  { %8 = vsyncpa [#allocation3], 0 }
   0x3   :  { %10 = vsyncpa [#allocation3 + $0x1], 0 }
   0x4   :  { %11 = vsyncpa [#allocation6], 0 }
   0x5   :  { %13 = vsyncpa [#allocation6 + $0x1], 0 }
   0x6   :  { %14 = vsyncpa [#allocation4], 0 }
   0x7   :  { %16 = vsyncpa [#allocation4 + $0x1], 0  ;;  %s1032_s12 = smov 0   ;;  %s1034_s13 = smov 0  }
   0x8   :  { %s1036_s14 = smov 0   ;;  %s1038_s15 = smov 0  }
   0x9   :  { %s1040_s16 = smov 0   ;;  %s1042_s17 = smov 0  }
   0xa LB: > { %1363 = sst [smem:[#allocation12_spill]] %s988_s14  ;;  %s1063_s18 = sadd.s32 4294967295, %s1000_s17   ;;  %s1000_s17 = sphi %s1042_s17, %s22_s17   ;;  %s996_s16 = sphi %s1040_s16, %s1387_s16   ;;  %s992_s15 = sphi %s1038_s15, %s1386_s15   ;;  %s988_s14 = sphi %s1036_s14, %s1382_s14   ;;  %s984_s13 = sphi %s1034_s13, %s1385_s13   ;;  %s980_s12 = sphi %s1032_s12, %s1384_s12  }
   0xb   : > { %s709_s19 = sadd.s32 4294967294, %s1000_s17   ;;  %s34_s20 = sadd.s32 1, %s996_s16 }
   0xc   : > { %s41_s21 = sadd.s32 1, %s988_s14  ;;  %p36_p0 = scmp.ge.s32.totalorder %s34_s20, 2 }
   0xd   : > { %p48_p1 = scmp.ne.s32.totalorder %s988_s14, %s984_s13  ;;  %p49_p2 = scmp.eq.s32.totalorder %s1000_s17, 0 }
   0xe   : > { %p54_p3 = scmp.ne.s32.totalorder %s984_s13, %s980_s12  ;;  %s1389_s20 = smov (%p36_p0, %s34_s20), 0 }
   0xf   : > { %1364 = sst [smem:[#allocation13_spill]] %s1389_s20  ;;  %p1075_p4 = por %p49_p2, %p48_p1 }
  0x10   : > { %p55_p5 = scmp.eq.s32.totalorder %s1063_s18, 0  ;;  %s38_s23 = ssub.s32 %s996_s16, %s1389_s20 }
  0x11   : > { %p136_p6 = scmp.eq.s32.totalorder %s1063_s18, 1  ;;  %p39_p7 = scmp.eq.s32.totalorder %s38_s23, 0 }
  0x12   : > { %p1083_p8 = por %p55_p5, %p54_p3  ;;  %p142_p10 = scmp.eq.s32.totalorder %s709_s19, 1 }
  0x13   : > { %p1087_p9 = por %p136_p6, %p48_p1  ;;  %p765_p13 = scmp.lt.s32.totalorder %s1000_s17, 2 }
  0x14   : > { %s1366_s24 = scalar_select %p1083_p8, 1, 0 }
  0x15   : > { %s1367_s25 = scalar_select %p1087_p9, 1, 0 }
  0x16   : > { %s1092_s26 = scalar_select %p39_p7, %s988_s14, %s41_s21  }
  0x17   : > { %p1094_p11 = por %p142_p10, %p54_p3  ;;  %s1101_s28 = sand.u32 1, %s988_s14  }
  0x18   : > { %1368 = sst [smem:[#allocation14_spill]] %s1092_s26  ;;  %s1356_s29 = sshll.u32 %s1101_s28, 3 }
  0x19   : > { %s1369_s27 = scalar_select %p1094_p11, 1, 0 }
  0x1a   : > { %s713_s30 = sshll.u32 %s996_s16, 7  ;;  %p1107_p0 = pnand %p765_p13, %p1075_p4 }
  0x1b   : > { %s180_s5 = sand.u32 1, %s1000_s17   ;;  %s1371_s1 = sld [smem:[#allocation15_spill]] }
  0x1c   : > { %s184_s9 = scalar_lea.vmem [#allocation5], %s1356_s29  ;;  %s716_s11 = sshll.u32 %s1101_s28, 4 }
  0x1d   : > { %s192_s10 = sshll.u32 %s184_s9, 4  ;;  %s1124_s19 = scalar_lea.sflag [#allocation6], %s180_s5  ;;  %s1122_s10 = int_to_ptr.vmem [resolvable:$true] %s192_s10 }
  0x1e   : > { %p1130_p2 = pneg %p1107_p0 }
  0x21   : > { %s1117_s8 = scalar_lea.hbm %s1371_s1, %s713_s30  ;;  %s829_s7 = scalar_lea.hbm %s1371_s1, 256 }
  0x22   : > { %s824_s21 = scalar_lea.hbm %s1117_s8, 128  ;;  %p830_p5 = scmp.lt.u32.totalorder %s1117_s8, %s1371_s1 }
  0x23   : > { %p825_p1 = scmp.ne.s32.totalorder %s1117_s8, %s824_s21  ;;  %p831_p6 = scmp.lt.u32.totalorder %s829_s7, %s824_s21 }
  0x24   : > { %p833_p10 = scmp.lt.u32.totalorder %s824_s21, %s1117_s8 }
  0x25   : > { %p827_p3 = pnand %p1130_p2, %p825_p1  ;;  %p832_p7 = por %p831_p6, %p830_p5 }
  0x27   : > { %p828_p4 = pneg %p827_p3  ;;  %p834_p13 = por %p833_p10, %p832_p7 }
  0x29   : > { %p835_p12 = pnand %p834_p13, %p828_p4 }
  0x2b   : > { %838 = shalt.err (!%p835_p12)
}
  0x2c   : > { %s839_s5 = scalar_lea.vmem %s1122_s10, 128  ;;  %s1002_s23 = smov [#allocation5]  }
  0x2d   : > { %p840_p1 = scmp.ne.s32.totalorder %s1122_s10, %s839_s5  ;;  %s844_s6 = sshll.u32 %s1002_s23, 4  ;;  %s845_s6 = int_to_ptr.vmem [resolvable:$false] %s844_s6 }
  0x2e   : > { %s846_s29 = scalar_lea.vmem %s845_s6, 256  ;;  %p847_p9 = scmp.lt.s32.totalorder %s1122_s10, %s845_s6 }
  0x2f   : > { %p842_p3 = pnand %p840_p1, %p1130_p2  ;;  %p848_p8 = scmp.lt.s32.totalorder %s846_s29, %s839_s5 }
  0x31   : > { %p843_p11 = pneg %p842_p3  ;;  %p849_p5 = por %p848_p8, %p847_p9 }
  0x33   : > { %p850_p6 = pnand %p849_p5, %p843_p11 }
  0x35   : > { %853 = shalt.err (!%p850_p6)
}
  0x36   : > { %757 = dma.hbm_to_vmem [thread:$0]  (!%p1107_p0), %s1117_s8, 128, %s1122_s10, %s1124_s19  }
  0x37   : > { %s203_s21 = scalar_lea.vmem [#allocation7], %s716_s11  ;;  %p719_p8 = scmp.ge.s32.totalorder %s1000_s17, 1 }
  0x38   : > { %s212_s7 = sshll.u32 %s203_s21, 4  ;;  %p220_p9 = scmp.lt.s32.totalorder %s1000_s17, 3  ;;  %s1157_s7 = int_to_ptr.vmem [resolvable:$true] %s212_s7 }
  0x39   : > { %s1169_s6 = scalar_lea.hbm %s1352_s0, %s713_s30  ;;  %s1374_s29 = sshll.u32 %s1101_s28, 3 }
  0x3a   : > { %p1160_p11 = pnand %p719_p8, %p220_p9  ;;  %s166_s8 = scalar_lea.vmem [#allocation2], %s1374_s29 }
  0x3b   : > { %s173_s10 = sshll.u32 %s166_s8, 4  ;;  %s733_s11 = sshll.u32 %s996_s16, 8  ;;  %s1174_s10 = int_to_ptr.vmem [resolvable:$true] %s173_s10 }
  0x3c   : > { %s1373_s9 = scalar_select %p1160_p11, 1, 0 }
  0x3d   : > { %s1179_s20 = scalar_lea.hbm %s1354_s2, %s733_s11  ;;  %s163_s26 = scalar_lea.sflag [#allocation3], %s1101_s28 }
  0x3e   : > { %s854_s14 = scalar_lea.hbm %s1169_s6, 128  ;;  %s859_s23 = scalar_lea.hbm %s1352_s0, 256 }
  0x3f   : > { %p855_p12 = scmp.ne.s32.totalorder %s1169_s6, %s854_s14  ;;  %p860_p10 = scmp.lt.u32.totalorder %s1169_s6, %s1352_s0 }
  0x40   : > { %p861_p13 = scmp.lt.u32.totalorder %s859_s23, %s854_s14  ;;  %p863_p3 = scmp.lt.u32.totalorder %s854_s14, %s1169_s6 }
  0x41   : > { %p857_p4 = pnand %p855_p12, %p1130_p2 }
  0x42   : > { %p862_p1 = por %p861_p13, %p860_p10 }
  0x43   : > { %p858_p7 = pneg %p857_p4 }
  0x44   : > { %p864_p5 = por %p863_p3, %p862_p1 }
  0x46   : > { %p865_p6 = pnand %p864_p5, %p858_p7 }
  0x48   : > { %868 = shalt.err (!%p865_p6)
}
  0x49   : > { %s869_s1 = scalar_lea.vmem %s1174_s10, 128  ;;  %s1003_s28 = smov [#allocation2]  }
  0x4a   : > { %p870_p8 = scmp.ne.s32.totalorder %s1174_s10, %s869_s1  ;;  %s874_s11 = sshll.u32 %s1003_s28, 4  ;;  %s875_s11 = int_to_ptr.vmem [resolvable:$false] %s874_s11 }
  0x4b   : > { %s876_s21 = scalar_lea.vmem %s875_s11, 256  ;;  %p877_p4 = scmp.lt.s32.totalorder %s1174_s10, %s875_s11 }
  0x4c   : > { %p872_p9 = pnand %p870_p8, %p1130_p2  ;;  %p878_p11 = scmp.lt.s32.totalorder %s876_s21, %s869_s1 }
  0x4e   : > { %p873_p12 = pneg %p872_p9  ;;  %p879_p10 = por %p878_p11, %p877_p4 }
  0x50   : > { %p880_p13 = pnand %p879_p10, %p873_p12 }
  0x52   : > { %883 = shalt.err (!%p880_p13)
}
  0x53   : > { %754 = dma.hbm_to_vmem [thread:$0]  (!%p1107_p0), %s1169_s6, 128, %s1174_s10, %s163_s26  }
  0x54   : > { %s884_s14 = scalar_lea.hbm %s1179_s20, 256  ;;  %s889_s23 = scalar_lea.hbm %s1354_s2, 512 }
  0x55   : > { %p885_p7 = scmp.ne.s32.totalorder %s1179_s20, %s884_s14  ;;  %p890_p11 = scmp.lt.u32.totalorder %s1179_s20, %s1354_s2 }
  0x56   : > { %p891_p5 = scmp.lt.u32.totalorder %s889_s23, %s884_s14  ;;  %p893_p8 = scmp.lt.u32.totalorder %s884_s14, %s1179_s20 }
  0x57   : > { %p887_p1 = pnand %p885_p7, %p1130_p2 }
  0x58   : > { %p892_p6 = por %p891_p5, %p890_p11 }
  0x59   : > { %p888_p3 = pneg %p887_p1 }
  0x5a   : > { %p894_p9 = por %p893_p8, %p892_p6 }
  0x5c   : > { %p895_p12 = pnand %p894_p9, %p888_p3 }
  0x5e   : > { %898 = shalt.err (!%p895_p12)
}
  0x5f   : > { %s899_s26 = scalar_lea.vmem %s1157_s7, 256  ;;  %s1004_s6 = smov [#allocation7]  }
  0x60   : > { %p900_p4 = scmp.ne.s32.totalorder %s1157_s7, %s899_s26  ;;  %s904_s10 = sshll.u32 %s1004_s6, 4  ;;  %s905_s10 = int_to_ptr.vmem [resolvable:$false] %s904_s10 }
  0x61   : > { %s906_s1 = scalar_lea.vmem %s905_s10, 512  ;;  %p907_p7 = scmp.lt.s32.totalorder %s1157_s7, %s905_s10 }
  0x62   : > { %p902_p10 = pnand %p900_p4, %p1130_p2  ;;  %p908_p1 = scmp.lt.s32.totalorder %s906_s1, %s899_s26 }
  0x64   : > { %p903_p13 = pneg %p902_p10  ;;  %p909_p11 = por %p908_p1, %p907_p7 }
  0x66   : > { %p910_p5 = pnand %p909_p11, %p903_p13 }
  0x68   : > { %913 = shalt.err (!%p910_p5)
}
  0x69   : > { %s1005_s28 = smov 128   ;;  %s1006_s11 = smov 8  }
  0x6a   : > { %760 = dma.hbm_to_vmem [thread:$0]  (!%p1107_p0), %s1179_s20, 256, %s1157_s7, %s1124_s19, %s1005_s28, %s1005_s28, %s1006_s11  }
  0x6b   : > { %p1375_p2 = scmp.ne.s32.totalorder %s1373_s9, 0 }
  0x6c   : > { %s1228_s22 = sand.u32 (!%p1375_p2), 1, %s984_s13   ;;  %p1376_p3 = scmp.ne.s32.totalorder (!%p1375_p2), %s1366_s24, 0 }
  0x6d   : > { %224 = sbr.rel (%p1375_p2) target bundleno = 1083 (0x43b), region = 32  ;;  %s720_s21 = sshll.u32 (!%p1375_p2), %s1228_s22, 3 }
  0x6e   : > { %s227_s14 = scalar_lea.sflag (!%p1375_p2), [#allocation3], %s1228_s22  ;;  %s230_s30 = scalar_lea.vmem (!%p1375_p2), [#allocation2], %s720_s21 }
  0x74   : > { %967 = dma.done.wait (%p1376_p3), %s227_s14, 128  }
  0x75   : > { %969 = vsyncadd (%p1376_p3), %s227_s14, 4294967168  ;;  %s235_s20 = sand.u32 1, %s1063_s18   ;;  %s239_s19 = scalar_lea.vmem [#allocation5], %s720_s21 }
  0x76   : > { %s236_s4 = scalar_lea.sflag [#allocation6], %s235_s20 }
  0x77   : > { %971 = dma.done.wait (%p1376_p3), %s236_s4, 384  }
  0x78   : > { %973 = vsyncadd (%p1376_p3), %s236_s4, 4294966912  ;;  %v287_v0 = vld [vmem:[%s239_s19] sm:$0xff]  ;;  %vm289_vm0 = vcmask 130048   ;;  %v286_v2 = vld [vmem:[%s230_s30] sm:$0xff]  ;;  %v1007_v6 = vmov 0   ;;  %vm369_vm1 = vcmask 64512   ;;  %v469_v23 = vlaneseq }
  0x79   : > { %337 = vxpose.xlu0.b32.start.end [1/1] (short) (narrow) %v287_v0, 16  ;;  %v297_v1 = vmul.f32 %v287_v0, %v287_v0  ;;  %738 = vmatprep.subr.mxu0 %v286_v2  ;;  %v288_v15 = vmul.f32 %v286_v2, %v286_v2  ;;  %s722_s18 = sshll.u32 %s1228_s22, 4  ;;  %vm1008_vm14 = vmmov 1   ;;  %s723_s7 = sshll.u32 %s1228_s22, 2 }
  0x7a   : > { %739 = vmatpush3.msra.mxu0 %v286_v2  ;;  %822 = vset.pattern.permute.xlu1 %v1007_v6  ;;  %v1245_v26 = vshrl.u32 %v469_v23, 7  ;;  %v1247_v30 = vand.u32 127, %v469_v23  ;;  %s248_s24 = scalar_lea.vmem [#allocation7], %s722_s18  ;;  %s734_s9 = sshll.u32 %s992_s15, 6 }
  0x7b   : > { %v298_v3 = vsel %vm289_vm0, %v297_v1, 0.0  ;;  %v290_v16 = vsel %vm289_vm0, %v288_v15, 0.0  ;;  %v519_v0 = vld [vmem:[%s248_s24] sm:$0xff]  ;;  %s280_s5 = scalar_lea.vmem [#allocation8], %s723_s7  ;;  %s1301_s26 = scalar_lea.hbm %s1355_s3, %s734_s9 }
  0x7c   : > { %v299_v4 = vrot.slane %v298_v3, 4  ;;  %v291_v17 = vrot.slane %v290_v16, 4  ;;  %v1250_v31 = vadd.s32 8, %v1245_v26  ;;  %vm477_vm3 = vcmp.eq.s32.totalorder %v1245_v26, %v1247_v30  ;;  %s577_s23 = sshll.u32 %s280_s5, 4  ;;  %s562_s15 = scalar_lea.sflag [#allocation4], %s1228_s22  ;;  %s1303_s23 = int_to_ptr.vmem [resolvable:$true] %s577_s23 }
  0x7d   : > { %v521_v61 = vsub.s32 %v1245_v26, %v1247_v30  ;;  %vm531_vm10 = vcmp.gt.s32.totalorder %v1247_v30, %v1245_v26  ;;  %vm533_vm11 = vcmp.ge.f32.partialorder %v519_v0, 0.3  ;;  %s914_s6 = scalar_lea.vmem %s1303_s23, 64  ;;  %p1378_p6 = scmp.ne.s32.totalorder %s1367_s25, 0 }
  0x7e   : > { %v300_v5 = vadd.f32 %v299_v4, %v298_v3  ;;  %v292_v18 = vadd.f32 %v291_v17, %v290_v16  ;;  %vm1361_vm2 = vcmp.eq.s32.totalorder %v1250_v31, %v1247_v30  ;;  %v522_v63 = vsub.s32 %v1250_v31, %v1247_v30  ;;  %v520_v3 = vld [vmem:[%s248_s24 + $0x8] sm:$0xff]  ;;  %vm535_vm13 = vmand %vm531_vm10, %vm533_vm11  ;;  %p915_p0 = scmp.ne.s32.totalorder %s1303_s23, %s914_s6  ;;  %s1009_s10 = smov [#allocation8]  }
  0x7f   : > { %v524_v62 = vsub.s32 0, %v521_v61  ;;  %vm545_vm10 = vmxor %vm477_vm3, %vm1008_vm14  ;;  %s918_s1 = sshll.u32 %s1009_s10, 4  ;;  %s919_s1 = int_to_ptr.vmem [resolvable:$false] %s918_s1 }
  0x80   : > { %v301_v7 = vrot.slane %v300_v5, 2  ;;  %v293_v19 = vrot.slane %v292_v18, 2  ;;  %v527_v2 = vsub.s32 0, %v522_v63  ;;  %p916_p8 = pnand %p915_p0, %p1378_p6  ;;  %s920_s28 = scalar_lea.vmem %s919_s1, 128 }
  0x81   : > { %v726_v1 = vmin.u32 %v524_v62, %v521_v61  ;;  %p921_p12 = scmp.lt.s32.totalorder %s1303_s23, %s919_s1  ;;  %p922_p4 = scmp.lt.s32.totalorder %s920_s28, %s914_s6 }
  0x82   : > { %v302_v8 = vadd.f32 %v301_v7, %v300_v5  ;;  %v294_v20 = vadd.f32 %v293_v19, %v292_v18  ;;  %v727_v4 = vmin.u32 %v527_v2, %v522_v63  ;;  %p917_p9 = pneg %p916_p8 }
  0x83   : > { %vm529_vm12 = vcmp.eq.s32.totalorder %v726_v1, 1  ;;  %p923_p10 = por %p922_p4, %p921_p12 }
  0x84   : > { %v303_v9 = vrot.slane %v302_v8, 1  ;;  %v295_v22 = vrot.slane %v294_v20, 1  ;;  %vm537_vm15 = vmxor %vm529_vm12, %vm1008_vm14 }
  0x85   : > { %p924_p13 = pnand %p923_p10, %p917_p9 }
  0x86   : > { %v304_v10 = vadd.f32 %v303_v9, %v302_v8  ;;  %v296_v24 = vadd.f32 %v295_v22, %v294_v20 }
  0x88   : > { %305 = vxpose.xlu0.b32.start.end [1/1] (short) (narrow) %v304_v10, 16 }
  0xb1   : > { %823 = vset.pattern.permute.xlu0 %v1007_v6 }
  0xf9   : > { %v353_v11 = vpop.trf.xlu0 }
  0xfa   : > { %740 = vmatprep.mubr.msk.f32.mxu0 %vm369_vm1, %v353_v11 }
  0xfd   : > { %v354_v12 = vpop.trf.xlu0 }
  0xfe   : > { %741 = vmatmul.mubr.msk.f32.vlgmr.msra.gmra.mrb[0].mxu0 %vm369_vm1, %v354_v12  ;;  %vm534_vm1 = vcmp.ge.f32.partialorder %v520_v3, 0.3 }
 0x108   : > { %v321_v13 = vpop.trf.xlu0 }
 0x109   : > { %453 = vperm.xlu1 %822, %v321_v13  }
 0x10c   : > { %v322_v14 = vpop.trf.xlu0 }
 0x10d   : > { %458 = vperm.xlu1 %822, %v322_v14  }
 0x188   : > { %v454_v21 = vpop.permute.xlu1 %453 }
 0x189   : > { %v461_v28 = vadd.f32 %v454_v21, %v296_v24 }
 0x18c   : > { %v459_v25 = vpop.permute.xlu1 %458 }
 0x18d   : > { %v462_v27 = vadd.f32 %v459_v25, %v296_v24 }
 0x1d1   : > { %v742_v29 = vpop.f32.mrb[0].mxu0 }
 0x1d2   : > { %v464_v32 = vmul.f32 2.0, %v742_v29  ;;  %v442_v33 = vpop.f32.mrb[1].mxu0 }
 0x1d3   : > { %v463_v34 = vmul.f32 2.0, %v442_v33 }
 0x1d4   : > { %v466_v35 = vsub.f32 %v462_v27, %v464_v32 }
 0x1d5   : > { %v465_v36 = vsub.f32 %v461_v28, %v463_v34 }
 0x1d6   : > { %v468_v37 = vmax.f32 %v466_v35, 0.0 }
 0x1d7   : > { %v467_v38 = vmax.f32 %v465_v36, 0.0 }
 0x1d8   : > { %v1259_v39 = vsel %vm1361_vm2, 1e+30, %v468_v37 }
 0x1d9   : > { %v479_v40 = vsel %vm477_vm3, 1e+30, %v467_v38  ;;  %v484_v41 = vsel %vm289_vm0, %v1259_v39, inf }
 0x1da   : > { %485 = vmin.xlane.f32.xlu0 %v484_v41  ;;  %v481_v42 = vsel %vm289_vm0, %v479_v40, inf }
 0x1db   : > { %482 = vmin.xlane.f32.xlu1 %v481_v42 }
 0x267   : > { %v486_v43 = vpop.xlane.xlu0 %485 }
 0x268   : > { %v483_v44 = vpop.xlane.xlu1 %482  ;;  %vm488_vm4 = vcmp.le.f32.partialorder %v1259_v39, %v486_v43 }
 0x269   : > { %vm487_vm5 = vcmp.le.f32.partialorder %v479_v40, %v483_v44  ;;  %v490_v47 = vsel %vm488_vm4, 1e+30, %v1259_v39  ;;  %vm530_vm4 = vcmp.eq.s32.totalorder %v727_v4, 1 }
 0x26a   : > { %v489_v45 = vsel %vm487_vm5, 1e+30, %v479_v40  ;;  %v494_v48 = vsel %vm289_vm0, %v490_v47, inf  ;;  %vm539_vm5 = vmand %vm535_vm13, %vm537_vm15  ;;  %vm1377_vm15 = vcmp.eq.s32.totalorder %v1250_v31, %v1247_v30 }
 0x26b   : > { %v491_v46 = vsel %vm289_vm0, %v489_v45, inf }
 0x26c   : > { %492 = vmin.xlane.f32.xlu1 %v491_v46 }
 0x270   : > { %495 = vmin.xlane.f32.xlu1 %v494_v48 }
 0x2f9   : > { %v493_v49 = vpop.xlane.xlu1 %492 }
 0x2fa   : > { %vm497_vm6 = vcmp.le.f32.partialorder %v489_v45, %v493_v49 }
 0x2fb   : > { %v499_v50 = vsel %vm497_vm6, 1e+30, %v489_v45 }
 0x2fc   : > { %v501_v51 = vsel %vm289_vm0, %v499_v50, inf }
 0x2fd   : > { %502 = vmin.xlane.f32.xlu1 %v501_v51  ;;  %v496_v52 = vpop.xlane.xlu1 %495 }
 0x2fe   : > { %vm498_vm7 = vcmp.le.f32.partialorder %v490_v47, %v496_v52 }
 0x2ff   : > { %v500_v53 = vsel %vm498_vm7, 1e+30, %v490_v47  ;;  %vm538_vm7 = vmxor %vm530_vm4, %vm1008_vm14 }
 0x300   : > { %v504_v54 = vsel %vm289_vm0, %v500_v53, inf }
 0x301   : > { %505 = vmin.xlane.f32.xlu1 %v504_v54 }
 0x38a   : > { %v503_v55 = vpop.xlane.xlu1 %502 }
 0x38b   : > { %vm507_vm8 = vcmp.le.f32.partialorder %v499_v50, %v503_v55 }
 0x38c   : > { %v509_v56 = vsel %vm507_vm8, 1e+30, %v499_v50  ;;  %vm541_vm8 = vmor %vm529_vm12, %vm539_vm5 }
 0x38d   : > { %v511_v57 = vsel %vm289_vm0, %v509_v56, inf }
 0x38e   : > { %512 = vmin.xlane.f32.xlu0 %v511_v57  ;;  %v506_v58 = vpop.xlane.xlu1 %505 }
 0x38f   : > { %vm508_vm9 = vcmp.le.f32.partialorder %v500_v53, %v506_v58 }
 0x390   : > { %v510_v59 = vsel %vm508_vm9, 1e+30, %v500_v53 }
 0x391   : > { %v514_v60 = vsel %vm289_vm0, %v510_v59, inf  ;;  %vm532_vm0 = vcmp.gt.s32.totalorder %v1247_v30, %v1250_v31 }
 0x392   : > { %515 = vmin.xlane.f32.xlu1 %v514_v60  ;;  %vm536_vm6 = vmand %vm532_vm0, %vm534_vm1 }
 0x393   : > { %vm540_vm9 = vmand %vm536_vm6, %vm538_vm7 }
 0x394   : > { %vm542_vm13 = vmor %vm530_vm4, %vm540_vm9 }
 0x395   : > { %vm546_vm0 = vmxor %vm1377_vm15, %vm1008_vm14  ;;  %vm558_vm14 = vcmask 123904  }
 0x41b   : > { %v513_v5 = vpop.xlane.xlu0 %512 }
 0x41c   : > { %vm517_vm11 = vcmp.le.f32.partialorder %v479_v40, %v513_v5 }
 0x41d   : > { %vm543_vm2 = vmor %vm541_vm8, %vm517_vm11 }
 0x41e   : > { %vm547_vm1 = vmand %vm543_vm2, %vm545_vm10 }
 0x41f   : > { %v516_v7 = vpop.xlane.xlu1 %515 }
 0x420   : > { %vm518_vm12 = vcmp.le.f32.partialorder %v1259_v39, %v516_v7 }
 0x421   : > { %vm544_vm5 = vmor %vm542_vm13, %vm518_vm12 }
 0x422   : > { %vm548_vm6 = vmand %vm544_vm5, %vm546_vm0 }
 0x423   : > { %vm549_vm7 = vmpackc.low %vm548_vm6, %vm547_vm1 }
 0x424   : > { %vm550_vm3 = vmpackc.even %vm549_vm7, %vm549_vm7 }
 0x425   : > { %v551_v8 = vsel %vm550_vm3, 16843009, %v1007_v6 }
 0x426   : > { %v552_v9 = vunpack.c.0.s8 %v551_v8  ;;  %v553_v10 = vunpack.c.1.s8 %v551_v8 }
 0x428   : > { %v554_v11 = vpack.c.b16 %v552_v9, %v552_v9  ;;  %v556_v12 = vpack.c.b16 %v553_v10, %v553_v10 }
 0x42a   : > { %v555_v6 = vpack.c.b8 %v554_v11, %v554_v11  ;;  %v557_v13 = vpack.c.b8 %v556_v12, %v556_v12 }
 0x42c   : > { %559 = vst.msk [vmem:[%s280_s5] sm:$0x3] %vm558_vm14, %v555_v6  ;;  %560 = vst.msk [vmem:[%s280_s5 + $0x2] sm:$0x3] %vm558_vm14, %v557_v13 }
 0x42d   : > { %927 = shalt.err (!%p924_p13)
}
 0x42e   : > { %s928_s11 = scalar_lea.hbm %s1301_s26, 64  ;;  %s932_s30 = scalar_lea.hbm %s1355_s3, 128 }
 0x42f   : > { %p929_p7 = scmp.ne.s32.totalorder %s1301_s26, %s928_s11  ;;  %p933_p5 = scmp.lt.u32.totalorder %s1301_s26, %s1355_s3 }
 0x430   : > { %p934_p2 = scmp.lt.u32.totalorder %s932_s30, %s928_s11  ;;  %p936_p0 = scmp.lt.u32.totalorder %s928_s11, %s1301_s26 }
 0x431   : > { %p930_p1 = pnand %p929_p7, %p1378_p6 }
 0x432   : > { %p935_p3 = por %p934_p2, %p933_p5 }
 0x433   : > { %p931_p11 = pneg %p930_p1 }
 0x434   : > { %p937_p8 = por %p936_p0, %p935_p3 }
 0x436   : > { %p938_p9 = pnand %p937_p8, %p931_p11 }
 0x438   : > { %941 = shalt.err (!%p938_p9)
}
 0x439   : > { %s1010_s19 = smov 32   ;;  %s1011_s18 = smov 2  }
 0x43a   : > { %749 = dma.vmem_to_hbm [thread:$0]  (%p1378_p6), %s1303_s23, 64, %s1301_s26, %s562_s15, %s1010_s19, %s1010_s19, %s1011_s18  }
 0x43b PF: > { %s592_s24 = sand.u32 1, %s980_s12   ;;  %p1379_p12 = scmp.ne.s32.totalorder %s1369_s27, 0 }
 0x43c   : > { %p1380_p4 = scmp.ge.s32.totalorder %s1000_s17, 2  ;;  %s593_s7 = scalar_lea.sflag [#allocation4], %s592_s24 }
 0x43e   : > { %p762_p10 = pnand %p1380_p4, %p1379_p12 }
 0x440   : > { %975 = dma.done.wait (!%p762_p10), %s593_s7, 64  }
 0x441   : > { %977 = vsyncadd (!%p762_p10), %s593_s7, 4294967232  ;;  %s22_s17 = sadd.s32 1, %s1000_s17   ;;  %s1381_s9 = sld [smem:[#allocation12_spill]] }
 0x442   : > { %p19_p13 = scmp.ge.s32.totalorder %s22_s17, 4   ;;  %s1382_s14 = sld [smem:[#allocation14_spill]] }
 0x443   : > { %s1383_s25 = sld [smem:[#allocation13_spill]]  ;;  %s1384_s12 = smov %s984_s13 }
 0x444   : > { %s1386_s15 = smov %s996_s16  ;;  %21 = sbr.rel (!%p19_p13) target bundleno = 10 (0xa), region = 101 }
 0x447   : > { %s1385_s13 = smov %s1381_s9 }
 0x449   : > { %s1387_s16 = smov %s1383_s25 }
 0x44b   :  { %598 = vsyncpa [#allocation3], 1 }
 0x44c   :  { %600 = vsyncpa [#allocation3 + $0x1], 1 }
 0x44d   :  { %601 = vsyncpa [#allocation6], 1 }
 0x44e   :  { %603 = vsyncpa [#allocation6 + $0x1], 1 }
 0x44f   :  { %604 = vsyncpa [#allocation4], 1 }
 0x450   :  { %606 = vsyncpa [#allocation4 + $0x1], 1 }

</bundles_post_ra>
